<compile_context>
chip_gen: v6e
topology: v6e:2x2x1
jax: 0.10.0
libtpu: 0.0.40
codegen_flags: <defaults>
</compile_context>

<pallas_src>
import functools
from math import sqrt

import jax
import jax.numpy as jnp
import numpy as np
from jax.experimental import pallas as pl
from jax.experimental.pallas import tpu as pltpu

_VMEM_LIMIT = 48 * 1024 * 1024  # > scoped default on all gens, < v7x physical


# ---------------------------------------------------------------------------
# Kernel 1: tiled dense linear projection  y = x @ W + b   (W already bf16)
# ---------------------------------------------------------------------------
def _linear_kernel(x_ref, w_ref, b_ref, o_ref):
    y = jnp.dot(x_ref[...].astype(jnp.bfloat16), w_ref[...],
                preferred_element_type=jnp.float32) + b_ref[...]
    o_ref[...] = y.astype(o_ref.dtype)


def linear(x2d, w_bf16, b, *, out_dtype=jnp.bfloat16, tm=512):
    """x2d: [N, d_in], w_bf16: [d_in, d_out] bf16, b: [d_out] f32."""
    N, d_in = x2d.shape
    d_out = w_bf16.shape[1]
    tm = min(tm, N)
    return pl.pallas_call(
        _linear_kernel,
        out_shape=jax.ShapeDtypeStruct((N, d_out), out_dtype),
        grid_spec=pltpu.PrefetchScalarGridSpec(
            num_scalar_prefetch=0,
            grid=(pl.cdiv(N, tm),),
            in_specs=[
                pl.BlockSpec((tm, d_in), lambda i: (i, 0)),
                pl.BlockSpec((d_in, d_out), lambda i: (0, 0)),
                pl.BlockSpec((1, d_out), lambda i: (0, 0)),
            ],
            out_specs=pl.BlockSpec((tm, d_out), lambda i: (i, 0)),
        ),
        compiler_params=pltpu.CompilerParams(
            dimension_semantics=("parallel",),
            vmem_limit_bytes=_VMEM_LIMIT),
    )(x2d, w_bf16, b.reshape(1, d_out).astype(jnp.float32))


# ---------------------------------------------------------------------------
# Kernel 2a: fused Q/K/V projections, distinct activations (cross-attn, L==S)
# ---------------------------------------------------------------------------
def _qkv_proj3_kernel(xq_ref, xk_ref, xv_ref,
                      wq_ref, wk_ref, wv_ref,
                      bq_ref, bk_ref, bv_ref,
                      q_ref, k_ref, v_ref):
    def proj(x_ref, w_ref, b_ref, o_ref):
        y = jnp.dot(x_ref[...].astype(jnp.bfloat16), w_ref[...],
                    preferred_element_type=jnp.float32) + b_ref[...]
        o_ref[...] = y.astype(o_ref.dtype)

    proj(xq_ref, wq_ref, bq_ref, q_ref)
    proj(xk_ref, wk_ref, bk_ref, k_ref)
    proj(xv_ref, wv_ref, bv_ref, v_ref)


def qkv_projection_cross(xq, xk, xv, wq, wk, wv, bq, bk, bv, *, tm=512):
    """All activations [N, d_model] (same N); weights bf16; outputs bf16."""
    N, d_model = xq.shape
    dq, dk, dv = wq.shape[1], wk.shape[1], wv.shape[1]
    tm = min(tm, N)

    x_spec = lambda: pl.BlockSpec((tm, d_model), lambda i: (i, 0))
    w_spec = lambda d: pl.BlockSpec((d_model, d), lambda i: (0, 0))
    b_spec = lambda d: pl.BlockSpec((1, d), lambda i: (0, 0))
    o_spec = lambda d: pl.BlockSpec((tm, d), lambda i: (i, 0))

    return pl.pallas_call(
        _qkv_proj3_kernel,
        out_shape=(jax.ShapeDtypeStruct((N, dq), jnp.bfloat16),
                   jax.ShapeDtypeStruct((N, dk), jnp.bfloat16),
                   jax.ShapeDtypeStruct((N, dv), jnp.bfloat16)),
        grid_spec=pltpu.PrefetchScalarGridSpec(
            num_scalar_prefetch=0,
            grid=(pl.cdiv(N, tm),),
            in_specs=[x_spec(), x_spec(), x_spec(),
                      w_spec(dq), w_spec(dk), w_spec(dv),
                      b_spec(dq), b_spec(dk), b_spec(dv)],
            out_specs=[o_spec(dq), o_spec(dk), o_spec(dv)],
        ),
        compiler_params=pltpu.CompilerParams(
            dimension_semantics=("parallel",),
            vmem_limit_bytes=_VMEM_LIMIT),
    )(xq, xk, xv, wq, wk, wv,
      bq.reshape(1, dq), bk.reshape(1, dk), bv.reshape(1, dv))


# ---------------------------------------------------------------------------
# Kernel 2b: fused Q/K/V projection with SHARED activation (self-attention):
#            one matmul against the concatenated weight Wq|Wk|Wv per row tile
# ---------------------------------------------------------------------------
def _qkv_proj_shared_kernel(x_ref, w_ref, b_ref, q_ref, k_ref, v_ref, *, dq, dk):
    y = jnp.dot(x_ref[...].astype(jnp.bfloat16), w_ref[...],
                preferred_element_type=jnp.float32) + b_ref[...]
    q_ref[...] = y[:, :dq].astype(q_ref.dtype)
    k_ref[...] = y[:, dq:dq + dk].astype(k_ref.dtype)
    v_ref[...] = y[:, dq + dk:].astype(v_ref.dtype)


def qkv_projection_shared(x2d, w_qkv, b_qkv, *, dq, dk, dv, tm=512):
    """x2d: [N, d_model]; w_qkv: [d_model, dq+dk+dv] bf16; b_qkv: [dq+dk+dv]."""
    N, d_model = x2d.shape
    d_all = dq + dk + dv
    tm = min(tm, N)
    kernel = functools.partial(_qkv_proj_shared_kernel, dq=dq, dk=dk)
    return pl.pallas_call(
        kernel,
        out_shape=(jax.ShapeDtypeStruct((N, dq), jnp.bfloat16),
                   jax.ShapeDtypeStruct((N, dk), jnp.bfloat16),
                   jax.ShapeDtypeStruct((N, dv), jnp.bfloat16)),
        grid_spec=pltpu.PrefetchScalarGridSpec(
            num_scalar_prefetch=0,
            grid=(pl.cdiv(N, tm),),
            in_specs=[
                pl.BlockSpec((tm, d_model), lambda i: (i, 0)),
                pl.BlockSpec((d_model, d_all), lambda i: (0, 0)),
                pl.BlockSpec((1, d_all), lambda i: (0, 0)),
            ],
            out_specs=[pl.BlockSpec((tm, dq), lambda i: (i, 0)),
                       pl.BlockSpec((tm, dk), lambda i: (i, 0)),
                       pl.BlockSpec((tm, dv), lambda i: (i, 0))],
        ),
        compiler_params=pltpu.CompilerParams(
            dimension_semantics=("parallel",),
            vmem_limit_bytes=_VMEM_LIMIT),
    )(x2d, w_qkv, b_qkv.reshape(1, d_all))


# ---------------------------------------------------------------------------
# Kernel 3: scaled-dot-product attention, heads on the grid
#           q: [B, H, L, E] bf16 (already scaled), k: [B, H, S, E], v: [B, H, S, D]
# ---------------------------------------------------------------------------
def _attn_kernel(q_ref, k_ref, v_ref, o_ref):
    q = q_ref[0, 0]                      # [tq, E] bf16 (1/sqrt(E) folded into Wq)
    k = k_ref[0, 0]                      # [S, E]  bf16
    v = v_ref[0, 0]                      # [S, D]  bf16
    s = jax.lax.dot_general(q, k, (((1,), (1,)), ((), ())),
                            preferred_element_type=jnp.float32)   # [tq, S]
    m = jnp.max(s, axis=-1, keepdims=True)
    p = jnp.exp(s - m)
    denom = jnp.sum(p, axis=-1, keepdims=True)
    o = jnp.dot(p.astype(jnp.bfloat16), v, preferred_element_type=jnp.float32)
    # deferred normalization: scale the [tq, D] output, not the [tq, S] probs
    o_ref[0, 0] = (o * pl.reciprocal(denom, approx=True)).astype(o_ref.dtype)


def _attn_kernel_with_probs(q_ref, k_ref, v_ref, o_ref, a_ref):
    q = q_ref[0, 0]
    k = k_ref[0, 0]
    v = v_ref[0, 0]
    s = jax.lax.dot_general(q, k, (((1,), (1,)), ((), ())),
                            preferred_element_type=jnp.float32)
    m = jnp.max(s, axis=-1, keepdims=True)
    p = jnp.exp(s - m)
    denom = jnp.sum(p, axis=-1, keepdims=True)
    o = jnp.dot(p.astype(jnp.bfloat16), v, preferred_element_type=jnp.float32)
    o_ref[0, 0] = (o * pl.reciprocal(denom, approx=True)).astype(o_ref.dtype)
    # exact normalization for the user-visible probabilities
    a_ref[0, 0] = (p * (1.0 / denom)).astype(a_ref.dtype)


def full_attention(q, k, v, *, output_attention=False, tq=512):
    """q/k/v: [B, H, L, E] / [B, H, S, E] / [B, H, S, D] bf16.
    Returns (out [B, H, L, D] bf16, attn [B, H, L, S] bf16 or None)."""
    B, H, L, E = q.shape
    S = k.shape[2]
    D = v.shape[3]
    tq = min(tq, L)
    grid = (B, H, pl.cdiv(L, tq))

    in_specs = [
        pl.BlockSpec((1, 1, tq, E), lambda b, h, i: (b, h, i, 0)),
        pl.BlockSpec((1, 1, S, E), lambda b, h, i: (b, h, 0, 0)),
        pl.BlockSpec((1, 1, S, D), lambda b, h, i: (b, h, 0, 0)),
    ]
    o_spec = pl.BlockSpec((1, 1, tq, D), lambda b, h, i: (b, h, i, 0))

    if output_attention:
        kernel = _attn_kernel_with_probs
        out_shape = (jax.ShapeDtypeStruct((B, H, L, D), jnp.bfloat16),
                     jax.ShapeDtypeStruct((B, H, L, S), jnp.bfloat16))
        out_specs = [o_spec,
                     pl.BlockSpec((1, 1, tq, S), lambda b, h, i: (b, h, i, 0))]
    else:
        kernel = _attn_kernel
        out_shape = jax.ShapeDtypeStruct((B, H, L, D), jnp.bfloat16)
        out_specs = o_spec

    res = pl.pallas_call(
        kernel,
        out_shape=out_shape,
        grid_spec=pltpu.PrefetchScalarGridSpec(
            num_scalar_prefetch=0,
            grid=grid,
            in_specs=in_specs,
            out_specs=out_specs,
        ),
        compiler_params=pltpu.CompilerParams(
            dimension_semantics=("parallel", "parallel", "parallel"),
            vmem_limit_bytes=_VMEM_LIMIT),
    )(q, k, v)

    if output_attention:
        return res
    return res, None


# ---------------------------------------------------------------------------
# AttentionLayer forward (layout plumbing in plain JAX, hot paths in Pallas)
# ---------------------------------------------------------------------------
def make_attention_layer_params(key, d_model, n_heads, d_keys=None, d_values=None):
    d_keys = d_keys or d_model // n_heads
    d_values = d_values or d_model // n_heads
    ks = jax.random.split(key, 8)

    def lin(kw, kb, d_in, d_out):
        bound = 1.0 / sqrt(d_in)
        w = jax.random.uniform(kw, (d_in, d_out), jnp.float32, -bound, bound)
        b = jax.random.uniform(kb, (d_out,), jnp.float32, -bound, bound)
        return w, b

    return {
        "q": lin(ks[0], ks[1], d_model, d_keys * n_heads),
        "k": lin(ks[2], ks[3], d_model, d_keys * n_heads),
        "v": lin(ks[4], ks[5], d_model, d_values * n_heads),
        "o": lin(ks[6], ks[7], d_values * n_heads, d_model),
    }


def _fold_params(params, n_heads):
    """Cast weights to bf16 once and fold 1/sqrt(E) into the Q projection."""
    qw, qb = params["q"]
    kw, kb = params["k"]
    vw, vb = params["v"]
    ow, ob = params["o"]
    E = qw.shape[1] // n_heads
    scale = 1.0 / sqrt(E)
    qw = (qw * scale).astype(jnp.bfloat16)
    qb = qb * scale
    return (qw, qb), (kw.astype(jnp.bfloat16), kb), \
           (vw.astype(jnp.bfloat16), vb), (ow.astype(jnp.bfloat16), ob)


def _split_heads(x2d, B, T, H):
    """[B*T, H*E] bf16 -> [B, H, T, E] (layout plumbing in the wrapper)."""
    E = x2d.shape[1] // H
    return x2d.reshape(B, T, H, E).transpose(0, 2, 1, 3)


def _attend_and_project(q2d, k2d, v2d, ow, ob, B, L, S, H, output_attention):
    q = _split_heads(q2d, B, L, H)
    k = _split_heads(k2d, B, S, H)
    v = _split_heads(v2d, B, S, H)
    out, attn = full_attention(q, k, v, output_attention=output_attention)
    D = v.shape[-1]
    out2d = out.transpose(0, 2, 1, 3).reshape(B * L, H * D)   # lane-dense slab
    d_model = ow.shape[1]
    y = linear(out2d, ow, ob, out_dtype=jnp.float32).reshape(B, L, d_model)
    if attn is not None:
        attn = attn.astype(jnp.float32)
    return y, attn


@functools.partial(jax.jit, static_argnames=("n_heads", "output_attention"))
def _forward_self(params, x, *, n_heads, output_attention):
    B, L, d_model = x.shape
    H = n_heads
    (qw, qb), (kw, kb), (vw, vb), (ow, ob) = _fold_params(params, H)
    dq, dk, dv = qw.shape[1], kw.shape[1], vw.shape[1]
    # single activation read, single matmul per tile against Wq|Wk|Wv
    w_qkv = jnp.concatenate([qw, kw, vw], axis=1)
    b_qkv = jnp.concatenate([qb, kb, vb], axis=0)
    q2d, k2d, v2d = qkv_projection_shared(
        x.reshape(B * L, d_model), w_qkv, b_qkv, dq=dq, dk=dk, dv=dv)
    return _attend_and_project(q2d, k2d, v2d, ow, ob, B, L, L, H,
                               output_attention)


@functools.partial(jax.jit, static_argnames=("n_heads", "output_attention"))
def _forward_cross(params, queries, keys, values, *, n_heads, output_attention):
    B, L, d_model = queries.shape
    _, S, _ = keys.shape
    H = n_heads
    (qw, qb), (kw, kb), (vw, vb), (ow, ob) = _fold_params(params, H)

    if L == S:
        q2d, k2d, v2d = qkv_projection_cross(
            queries.reshape(B * L, d_model),
            keys.reshape(B * S, d_model),
            values.reshape(B * S, d_model),
            qw, kw, vw, qb, kb, vb)
    else:
        q2d = linear(queries.reshape(B * L, d_model), qw, qb)
        k2d = linear(keys.reshape(B * S, d_model), kw, kb)
        v2d = linear(values.reshape(B * S, d_model), vw, vb)

    return _attend_and_project(q2d, k2d, v2d, ow, ob, B, L, S, H,
                               output_attention)


def attention_layer_forward(params, queries, keys, values, *, n_heads,
                            output_attention=False):
    # TODO(synk): attn_mask / causal masking not supported (attn_mask is None).
    if queries is keys and keys is values:
        return _forward_self(params, queries, n_heads=n_heads,
                             output_attention=output_attention)
    return _forward_cross(params, queries, keys, values, n_heads=n_heads,
                          output_attention=output_attention)


# ---------------------------------------------------------------------------
# Pure-JAX reference for sanity checking
# ---------------------------------------------------------------------------
def reference_forward(params, queries, keys, values, n_heads):
    qw, qb = params["q"]
    kw, kb = params["k"]
    vw, vb = params["v"]
    ow, ob = params["o"]
    B, L, _ = queries.shape
    _, S, _ = keys.shape
    H = n_heads
    q = (queries @ qw + qb).reshape(B, L, H, -1)
    k = (keys @ kw + kb).reshape(B, S, H, -1)
    v = (values @ vw + vb).reshape(B, S, H, -1)
    E = q.shape[-1]
    scores = jnp.einsum("blhe,bshe->bhls", q, k) / sqrt(E)
    a = jax.nn.softmax(scores, axis=-1)
    out = jnp.einsum("bhls,bshd->blhd", a, v).reshape(B, L, -1)
    return out @ ow + ob, a


if __name__ == "__main__":
    B, L, S = 2, 8, 8
    d_model, n_heads = 32, 4

    key = jax.random.PRNGKey(0)
    kp, kq, kk, kv = jax.random.split(key, 4)
    params = make_attention_layer_params(kp, d_model, n_heads)

    queries = jax.random.normal(kq, (B, L, d_model), jnp.float32)
    keys = jax.random.normal(kk, (B, S, d_model), jnp.float32)
    values = jax.random.normal(kv, (B, S, d_model), jnp.float32)

    # main path: attention probabilities not requested (PyTorch default -> None)
    out, attn = attention_layer_forward(params, queries, keys, values,
                                        n_heads=n_heads, output_attention=False)
    jax.block_until_ready(out)
    assert out.shape == (B, L, d_model)
    assert attn is None

    # optional path: attention probabilities requested
    out2, attn2 = attention_layer_forward(params, queries, keys, values,
                                          n_heads=n_heads, output_attention=True)
    jax.block_until_ready((out2, attn2))
    assert out2.shape == (B, L, d_model)
    assert attn2.shape == (B, n_heads, L, S)

    ref_out, ref_attn = reference_forward(params, queries, keys, values, n_heads)
    np.testing.assert_allclose(np.asarray(out2), np.asarray(ref_out),
                               rtol=5e-2, atol=5e-2)
    np.testing.assert_allclose(np.asarray(attn2), np.asarray(ref_attn),
                               rtol=5e-2, atol=5e-2)
    np.testing.assert_allclose(np.asarray(attn2.sum(-1)), 1.0, atol=5e-2)

    # self-attention fast path: shared activation + concatenated QKV weight
    out_s, _ = attention_layer_forward(params, queries, queries, queries,
                                       n_heads=n_heads, output_attention=False)
    jax.block_until_ready(out_s)
    ref_s, _ = reference_forward(params, queries, queries, queries, n_heads)
    np.testing.assert_allclose(np.asarray(out_s), np.asarray(ref_s),
                               rtol=5e-2, atol=5e-2)

    # cross-attention with L != S: separate linear projections
    S2 = 16
    keys2 = jax.random.normal(jax.random.PRNGKey(1), (B, S2, d_model), jnp.float32)
    values2 = jax.random.normal(jax.random.PRNGKey(2), (B, S2, d_model), jnp.float32)
    out_c, _ = attention_layer_forward(params, queries, keys2, values2,
                                       n_heads=n_heads, output_attention=False)
    jax.block_until_ready(out_c)
    ref_c, _ = reference_forward(params, queries, keys2, values2, n_heads)
    np.testing.assert_allclose(np.asarray(out_c), np.asarray(ref_c),
                               rtol=5e-2, atol=5e-2)

    print("KERNEL_OK")
</pallas_src>

<mosaic_0001>
module attributes {stable_mosaic.version = 11 : i64} {
  func.func @_attn_kernel(%arg0: i32, %arg1: i32, %arg2: i32, %arg3: memref<1x1x8x8xbf16, #tpu.memory_space<vmem>>, %arg4: memref<1x1x8x8xbf16, #tpu.memory_space<vmem>>, %arg5: memref<1x1x8x8xbf16, #tpu.memory_space<vmem>>, %arg6: memref<1x1x8x8xbf16, #tpu.memory_space<vmem>>) attributes {dimension_semantics = [#tpu.dimension_semantics<parallel>, #tpu.dimension_semantics<parallel>, #tpu.dimension_semantics<parallel>], iteration_bounds = array<i64: 2, 4, 1>, scalar_prefetch = 0 : i64, scratch_operands = 0 : i64, tpu.core_type = #tpu.core_type<tc>, window_params = [{transform_indices = @transform_0, window_bounds = array<i64: 1, 1, 8, 8>}, {transform_indices = @transform_1, window_bounds = array<i64: 1, 1, 8, 8>}, {transform_indices = @transform_2, window_bounds = array<i64: 1, 1, 8, 8>}, {transform_indices = @transform_3, window_bounds = array<i64: 1, 1, 8, 8>}]} {
    %c0 = arith.constant 0 : index
    %c0_0 = arith.constant 0 : index
    %c0_1 = arith.constant 0 : index
    %c0_2 = arith.constant 0 : index
    %0 = vector.load %arg3[%c0, %c0_0, %c0_1, %c0_2] : memref<1x1x8x8xbf16, #tpu.memory_space<vmem>>, vector<1x1x8x8xbf16>
    %1 = vector.shape_cast %0 : vector<1x1x8x8xbf16> to vector<8x8xbf16>
    %c0_3 = arith.constant 0 : index
    %c0_4 = arith.constant 0 : index
    %c0_5 = arith.constant 0 : index
    %c0_6 = arith.constant 0 : index
    %2 = vector.load %arg4[%c0_3, %c0_4, %c0_5, %c0_6] : memref<1x1x8x8xbf16, #tpu.memory_space<vmem>>, vector<1x1x8x8xbf16>
    %3 = vector.shape_cast %2 : vector<1x1x8x8xbf16> to vector<8x8xbf16>
    %c0_7 = arith.constant 0 : index
    %c0_8 = arith.constant 0 : index
    %c0_9 = arith.constant 0 : index
    %c0_10 = arith.constant 0 : index
    %4 = vector.load %arg5[%c0_7, %c0_8, %c0_9, %c0_10] : memref<1x1x8x8xbf16, #tpu.memory_space<vmem>>, vector<1x1x8x8xbf16>
    %5 = vector.shape_cast %4 : vector<1x1x8x8xbf16> to vector<8x8xbf16>
    %cst = arith.constant dense<0.000000e+00> : vector<8x8xf32>
    %6 = tpu.matmul %1, %3, %cst {dimension_numbers = #tpu.dot_dimension_numbers<[1], [1], [0], [0], [0, 0, 1, 0], [], []>} : vector<8x8xbf16>, vector<8x8xbf16>, vector<8x8xf32> -> vector<8x8xf32>
    %cst_11 = arith.constant dense<0xFF800000> : vector<8xf32>
    %7 = vector.multi_reduction <maximumf>, %6, %cst_11 [1] : vector<8x8xf32> to vector<8xf32>
    %8 = vector.shape_cast %7 : vector<8xf32> to vector<8x1xf32>
    %9 = vector.broadcast %8 : vector<8x1xf32> to vector<8x8xf32>
    %10 = arith.subf %6, %9 : vector<8x8xf32>
    %11 = math.exp %10 : vector<8x8xf32>
    %cst_12 = arith.constant dense<0.000000e+00> : vector<8xf32>
    %12 = vector.multi_reduction <add>, %11, %cst_12 [1] : vector<8x8xf32> to vector<8xf32>
    %13 = vector.shape_cast %12 : vector<8xf32> to vector<8x1xf32>
    %14 = arith.truncf %11 : vector<8x8xf32> to vector<8x8xbf16>
    %cst_13 = arith.constant dense<0.000000e+00> : vector<8x8xf32>
    %15 = tpu.matmul %14, %5, %cst_13 {dimension_numbers = #tpu.dot_dimension_numbers<[1], [0], [0], [1], [0, 0, 1, 1], [], []>} : vector<8x8xbf16>, vector<8x8xbf16>, vector<8x8xf32> -> vector<8x8xf32>
    %16 = tpu.reciprocal %13 {approx = true} : vector<8x1xf32> -> vector<8x1xf32>
    %17 = vector.broadcast %16 : vector<8x1xf32> to vector<8x8xf32>
    %18 = arith.mulf %15, %17 : vector<8x8xf32>
    %19 = arith.truncf %18 : vector<8x8xf32> to vector<8x8xbf16>
    %c0_14 = arith.constant 0 : index
    %c0_15 = arith.constant 0 : index
    %c0_16 = arith.constant 0 : index
    %c0_17 = arith.constant 0 : index
    %20 = vector.load %arg6[%c0_14, %c0_15, %c0_16, %c0_17] : memref<1x1x8x8xbf16, #tpu.memory_space<vmem>>, vector<1x1x8x8xbf16>
    %21 = vector.shape_cast %20 : vector<1x1x8x8xbf16> to vector<8x8xbf16>
    %22 = vector.shape_cast %19 : vector<8x8xbf16> to vector<1x1x8x8xbf16>
    tpu.vector_store %arg6[%c0_14, %c0_15, %c0_16, %c0_17], %22 {strides = array<i32>} : memref<1x1x8x8xbf16, #tpu.memory_space<vmem>>, vector<1x1x8x8xbf16>,
    return
  }
  func.func @transform_0(%arg0: i32, %arg1: i32, %arg2: i32) -> (i32, i32, i32, i32) {
    %c0_i32 = arith.constant 0 : i32
    %c0_i32_0 = arith.constant 0 : i32
    return %arg0, %arg1, %arg2, %c0_i32 : i32, i32, i32, i32
  }
  func.func @transform_1(%arg0: i32, %arg1: i32, %arg2: i32) -> (i32, i32, i32, i32) {
    %c0_i32 = arith.constant 0 : i32
    %c0_i32_0 = arith.constant 0 : i32
    %c0_i32_1 = arith.constant 0 : i32
    return %arg0, %arg1, %c0_i32, %c0_i32_0 : i32, i32, i32, i32
  }
  func.func @transform_2(%arg0: i32, %arg1: i32, %arg2: i32) -> (i32, i32, i32, i32) {
    %c0_i32 = arith.constant 0 : i32
    %c0_i32_0 = arith.constant 0 : i32
    %c0_i32_1 = arith.constant 0 : i32
    return %arg0, %arg1, %c0_i32, %c0_i32_0 : i32, i32, i32, i32
  }
  func.func @transform_3(%arg0: i32, %arg1: i32, %arg2: i32) -> (i32, i32, i32, i32) {
    %c0_i32 = arith.constant 0 : i32
    %c0_i32_0 = arith.constant 0 : i32
    return %arg0, %arg1, %arg2, %c0_i32 : i32, i32, i32, i32
  }
}

module attributes {stable_mosaic.version = 11 : i64} {
  func.func @_qkv_proj3_kernel(%arg0: i32, %arg1: memref<16x32xf32, #tpu.memory_space<vmem>>, %arg2: memref<16x32xf32, #tpu.memory_space<vmem>>, %arg3: memref<16x32xf32, #tpu.memory_space<vmem>>, %arg4: memref<32x32xbf16, #tpu.memory_space<vmem>>, %arg5: memref<32x32xbf16, #tpu.memory_space<vmem>>, %arg6: memref<32x32xbf16, #tpu.memory_space<vmem>>, %arg7: memref<1x32xf32, #tpu.memory_space<vmem>>, %arg8: memref<1x32xf32, #tpu.memory_space<vmem>>, %arg9: memref<1x32xf32, #tpu.memory_space<vmem>>, %arg10: memref<16x32xbf16, #tpu.memory_space<vmem>>, %arg11: memref<16x32xbf16, #tpu.memory_space<vmem>>, %arg12: memref<16x32xbf16, #tpu.memory_space<vmem>>) attributes {dimension_semantics = [#tpu.dimension_semantics<parallel>], iteration_bounds = array<i64: 1>, scalar_prefetch = 0 : i64, scratch_operands = 0 : i64, tpu.core_type = #tpu.core_type<tc>, window_params = [{transform_indices = @transform_0, window_bounds = array<i64: 16, 32>}, {transform_indices = @transform_1, window_bounds = array<i64: 16, 32>}, {transform_indices = @transform_2, window_bounds = array<i64: 16, 32>}, {pipeline_mode = #tpu.pipeline_mode<synchronous>, transform_indices = @transform_3, window_bounds = array<i64: 32, 32>}, {pipeline_mode = #tpu.pipeline_mode<synchronous>, transform_indices = @transform_4, window_bounds = array<i64: 32, 32>}, {pipeline_mode = #tpu.pipeline_mode<synchronous>, transform_indices = @transform_5, window_bounds = array<i64: 32, 32>}, {pipeline_mode = #tpu.pipeline_mode<synchronous>, transform_indices = @transform_6, window_bounds = array<i64: 1, 32>}, {pipeline_mode = #tpu.pipeline_mode<synchronous>, transform_indices = @transform_7, window_bounds = array<i64: 1, 32>}, {pipeline_mode = #tpu.pipeline_mode<synchronous>, transform_indices = @transform_8, window_bounds = array<i64: 1, 32>}, {transform_indices = @transform_9, window_bounds = array<i64: 16, 32>}, {transform_indices = @transform_10, window_bounds = array<i64: 16, 32>}, {transform_indices = @transform_11, window_bounds = array<i64: 16, 32>}]} {
    %c0 = arith.constant 0 : index
    %c0_0 = arith.constant 0 : index
    %0 = vector.load %arg1[%c0, %c0_0] : memref<16x32xf32, #tpu.memory_space<vmem>>, vector<16x32xf32>
    %1 = arith.truncf %0 : vector<16x32xf32> to vector<16x32xbf16>
    %c0_1 = arith.constant 0 : index
    %c0_2 = arith.constant 0 : index
    %2 = vector.load %arg4[%c0_1, %c0_2] : memref<32x32xbf16, #tpu.memory_space<vmem>>, vector<32x32xbf16>
    %cst = arith.constant dense<0.000000e+00> : vector<16x32xf32>
    %3 = tpu.matmul %1, %2, %cst {dimension_numbers = #tpu.dot_dimension_numbers<[1], [0], [0], [1], [0, 0, 1, 1], [], []>} : vector<16x32xbf16>, vector<32x32xbf16>, vector<16x32xf32> -> vector<16x32xf32>
    %c0_3 = arith.constant 0 : index
    %c0_4 = arith.constant 0 : index
    %4 = vector.load %arg7[%c0_3, %c0_4] : memref<1x32xf32, #tpu.memory_space<vmem>>, vector<1x32xf32>
    %5 = vector.broadcast %4 : vector<1x32xf32> to vector<16x32xf32>
    %6 = arith.addf %3, %5 : vector<16x32xf32>
    %7 = arith.truncf %6 : vector<16x32xf32> to vector<16x32xbf16>
    %c0_5 = arith.constant 0 : index
    %c0_6 = arith.constant 0 : index
    %8 = vector.load %arg10[%c0_5, %c0_6] : memref<16x32xbf16, #tpu.memory_space<vmem>>, vector<16x32xbf16>
    tpu.vector_store %arg10[%c0_5, %c0_6], %7 {strides = array<i32>} : memref<16x32xbf16, #tpu.memory_space<vmem>>, vector<16x32xbf16>,
    %c0_7 = arith.constant 0 : index
    %c0_8 = arith.constant 0 : index
    %9 = vector.load %arg2[%c0_7, %c0_8] : memref<16x32xf32, #tpu.memory_space<vmem>>, vector<16x32xf32>
    %10 = arith.truncf %9 : vector<16x32xf32> to vector<16x32xbf16>
    %c0_9 = arith.constant 0 : index
    %c0_10 = arith.constant 0 : index
    %11 = vector.load %arg5[%c0_9, %c0_10] : memref<32x32xbf16, #tpu.memory_space<vmem>>, vector<32x32xbf16>
    %cst_11 = arith.constant dense<0.000000e+00> : vector<16x32xf32>
    %12 = tpu.matmul %10, %11, %cst_11 {dimension_numbers = #tpu.dot_dimension_numbers<[1], [0], [0], [1], [0, 0, 1, 1], [], []>} : vector<16x32xbf16>, vector<32x32xbf16>, vector<16x32xf32> -> vector<16x32xf32>
    %c0_12 = arith.constant 0 : index
    %c0_13 = arith.constant 0 : index
    %13 = vector.load %arg8[%c0_12, %c0_13] : memref<1x32xf32, #tpu.memory_space<vmem>>, vector<1x32xf32>
    %14 = vector.broadcast %13 : vector<1x32xf32> to vector<16x32xf32>
    %15 = arith.addf %12, %14 : vector<16x32xf32>
    %16 = arith.truncf %15 : vector<16x32xf32> to vector<16x32xbf16>
    %c0_14 = arith.constant 0 : index
    %c0_15 = arith.constant 0 : index
    %17 = vector.load %arg11[%c0_14, %c0_15] : memref<16x32xbf16, #tpu.memory_space<vmem>>, vector<16x32xbf16>
    tpu.vector_store %arg11[%c0_14, %c0_15], %16 {strides = array<i32>} : memref<16x32xbf16, #tpu.memory_space<vmem>>, vector<16x32xbf16>,
    %c0_16 = arith.constant 0 : index
    %c0_17 = arith.constant 0 : index
    %18 = vector.load %arg3[%c0_16, %c0_17] : memref<16x32xf32, #tpu.memory_space<vmem>>, vector<16x32xf32>
    %19 = arith.truncf %18 : vector<16x32xf32> to vector<16x32xbf16>
    %c0_18 = arith.constant 0 : index
    %c0_19 = arith.constant 0 : index
    %20 = vector.load %arg6[%c0_18, %c0_19] : memref<32x32xbf16, #tpu.memory_space<vmem>>, vector<32x32xbf16>
    %cst_20 = arith.constant dense<0.000000e+00> : vector<16x32xf32>
    %21 = tpu.matmul %19, %20, %cst_20 {dimension_numbers = #tpu.dot_dimension_numbers<[1], [0], [0], [1], [0, 0, 1, 1], [], []>} : vector<16x32xbf16>, vector<32x32xbf16>, vector<16x32xf32> -> vector<16x32xf32>
    %c0_21 = arith.constant 0 : index
    %c0_22 = arith.constant 0 : index
    %22 = vector.load %arg9[%c0_21, %c0_22] : memref<1x32xf32, #tpu.memory_space<vmem>>, vector<1x32xf32>
    %23 = vector.broadcast %22 : vector<1x32xf32> to vector<16x32xf32>
    %24 = arith.addf %21, %23 : vector<16x32xf32>
    %25 = arith.truncf %24 : vector<16x32xf32> to vector<16x32xbf16>
    %c0_23 = arith.constant 0 : index
    %c0_24 = arith.constant 0 : index
    %26 = vector.load %arg12[%c0_23, %c0_24] : memref<16x32xbf16, #tpu.memory_space<vmem>>, vector<16x32xbf16>
    tpu.vector_store %arg12[%c0_23, %c0_24], %25 {strides = array<i32>} : memref<16x32xbf16, #tpu.memory_space<vmem>>, vector<16x32xbf16>,
    return
  }
  func.func @transform_0(%arg0: i32) -> (i32, i32) {
    %c0_i32 = arith.constant 0 : i32
    %c0_i32_0 = arith.constant 0 : i32
    return %arg0, %c0_i32 : i32, i32
  }
  func.func @transform_1(%arg0: i32) -> (i32, i32) {
    %c0_i32 = arith.constant 0 : i32
    %c0_i32_0 = arith.constant 0 : i32
    return %arg0, %c0_i32 : i32, i32
  }
  func.func @transform_2(%arg0: i32) -> (i32, i32) {
    %c0_i32 = arith.constant 0 : i32
    %c0_i32_0 = arith.constant 0 : i32
    return %arg0, %c0_i32 : i32, i32
  }
  func.func @transform_3(%arg0: i32) -> (i32, i32) {
    %c0_i32 = arith.constant 0 : i32
    %c0_i32_0 = arith.constant 0 : i32
    %c0_i32_1 = arith.constant 0 : i32
    return %c0_i32, %c0_i32_0 : i32, i32
  }
  func.func @transform_4(%arg0: i32) -> (i32, i32) {
    %c0_i32 = arith.constant 0 : i32
    %c0_i32_0 = arith.constant 0 : i32
    %c0_i32_1 = arith.constant 0 : i32
    return %c0_i32, %c0_i32_0 : i32, i32
  }
  func.func @transform_5(%arg0: i32) -> (i32, i32) {
    %c0_i32 = arith.constant 0 : i32
    %c0_i32_0 = arith.constant 0 : i32
    %c0_i32_1 = arith.constant 0 : i32
    return %c0_i32, %c0_i32_0 : i32, i32
  }
  func.func @transform_6(%arg0: i32) -> (i32, i32) {
    %c0_i32 = arith.constant 0 : i32
    %c0_i32_0 = arith.constant 0 : i32
    %c0_i32_1 = arith.constant 0 : i32
    return %c0_i32, %c0_i32_0 : i32, i32
  }
  func.func @transform_7(%arg0: i32) -> (i32, i32) {
    %c0_i32 = arith.constant 0 : i32
    %c0_i32_0 = arith.constant 0 : i32
    %c0_i32_1 = arith.constant 0 : i32
    return %c0_i32, %c0_i32_0 : i32, i32
  }
  func.func @transform_8(%arg0: i32) -> (i32, i32) {
    %c0_i32 = arith.constant 0 : i32
    %c0_i32_0 = arith.constant 0 : i32
    %c0_i32_1 = arith.constant 0 : i32
    return %c0_i32, %c0_i32_0 : i32, i32
  }
  func.func @transform_9(%arg0: i32) -> (i32, i32) {
    %c0_i32 = arith.constant 0 : i32
    %c0_i32_0 = arith.constant 0 : i32
    return %arg0, %c0_i32 : i32, i32
  }
  func.func @transform_10(%arg0: i32) -> (i32, i32) {
    %c0_i32 = arith.constant 0 : i32
    %c0_i32_0 = arith.constant 0 : i32
    return %arg0, %c0_i32 : i32, i32
  }
  func.func @transform_11(%arg0: i32) -> (i32, i32) {
    %c0_i32 = arith.constant 0 : i32
    %c0_i32_0 = arith.constant 0 : i32
    return %arg0, %c0_i32 : i32, i32
  }
}

module attributes {stable_mosaic.version = 11 : i64} {
  func.func @_linear_kernel(%arg0: i32, %arg1: memref<16x32xbf16, #tpu.memory_space<vmem>>, %arg2: memref<32x32xbf16, #tpu.memory_space<vmem>>, %arg3: memref<1x32xf32, #tpu.memory_space<vmem>>, %arg4: memref<16x32xf32, #tpu.memory_space<vmem>>) attributes {dimension_semantics = [#tpu.dimension_semantics<parallel>], iteration_bounds = array<i64: 1>, scalar_prefetch = 0 : i64, scratch_operands = 0 : i64, tpu.core_type = #tpu.core_type<tc>, window_params = [{transform_indices = @transform_0, window_bounds = array<i64: 16, 32>}, {pipeline_mode = #tpu.pipeline_mode<synchronous>, transform_indices = @transform_1, window_bounds = array<i64: 32, 32>}, {pipeline_mode = #tpu.pipeline_mode<synchronous>, transform_indices = @transform_2, window_bounds = array<i64: 1, 32>}, {transform_indices = @transform_3, window_bounds = array<i64: 16, 32>}]} {
    %c0 = arith.constant 0 : index
    %c0_0 = arith.constant 0 : index
    %0 = vector.load %arg1[%c0, %c0_0] : memref<16x32xbf16, #tpu.memory_space<vmem>>, vector<16x32xbf16>
    %c0_1 = arith.constant 0 : index
    %c0_2 = arith.constant 0 : index
    %1 = vector.load %arg2[%c0_1, %c0_2] : memref<32x32xbf16, #tpu.memory_space<vmem>>, vector<32x32xbf16>
    %cst = arith.constant dense<0.000000e+00> : vector<16x32xf32>
    %2 = tpu.matmul %0, %1, %cst {dimension_numbers = #tpu.dot_dimension_numbers<[1], [0], [0], [1], [0, 0, 1, 1], [], []>} : vector<16x32xbf16>, vector<32x32xbf16>, vector<16x32xf32> -> vector<16x32xf32>
    %c0_3 = arith.constant 0 : index
    %c0_4 = arith.constant 0 : index
    %3 = vector.load %arg3[%c0_3, %c0_4] : memref<1x32xf32, #tpu.memory_space<vmem>>, vector<1x32xf32>
    %4 = vector.broadcast %3 : vector<1x32xf32> to vector<16x32xf32>
    %5 = arith.addf %2, %4 : vector<16x32xf32>
    %c0_5 = arith.constant 0 : index
    %c0_6 = arith.constant 0 : index
    %6 = vector.load %arg4[%c0_5, %c0_6] : memref<16x32xf32, #tpu.memory_space<vmem>>, vector<16x32xf32>
    tpu.vector_store %arg4[%c0_5, %c0_6], %5 {strides = array<i32>} : memref<16x32xf32, #tpu.memory_space<vmem>>, vector<16x32xf32>,
    return
  }
  func.func @transform_0(%arg0: i32) -> (i32, i32) {
    %c0_i32 = arith.constant 0 : i32
    %c0_i32_0 = arith.constant 0 : i32
    return %arg0, %c0_i32 : i32, i32
  }
  func.func @transform_1(%arg0: i32) -> (i32, i32) {
    %c0_i32 = arith.constant 0 : i32
    %c0_i32_0 = arith.constant 0 : i32
    %c0_i32_1 = arith.constant 0 : i32
    return %c0_i32, %c0_i32_0 : i32, i32
  }
  func.func @transform_2(%arg0: i32) -> (i32, i32) {
    %c0_i32 = arith.constant 0 : i32
    %c0_i32_0 = arith.constant 0 : i32
    %c0_i32_1 = arith.constant 0 : i32
    return %c0_i32, %c0_i32_0 : i32, i32
  }
  func.func @transform_3(%arg0: i32) -> (i32, i32) {
    %c0_i32 = arith.constant 0 : i32
    %c0_i32_0 = arith.constant 0 : i32
    return %arg0, %c0_i32 : i32, i32
  }
}

</mosaic_0001>

<bundles_post_ra>
// kernel: _forward_cross.5
= control target key start
LH: loop header
LB: loop body
LE: loop exit
PB: predicated region body
PF: predicated region fallthrough
CT: control target
= control target key end

     0   :  { %v155_v1 = vmov 0.0   ;;  %vm156_vm0 = vmmov 0   ;;  %s195_s0 = inlined_call_operand.vmem [shape: bf16[16,32], index: 0, kind: input, shape index: {}]   ;;  %s196_s1 = inlined_call_operand.vmem [shape: bf16[32,32], index: 1, kind: input, shape index: {}]   ;;  %s197_s2 = inlined_call_operand.vmem [shape: f32[1,32], index: 2, kind: input, shape index: {}]   ;;  %s198_s3 = inlined_call_operand.hbm [shape: f32[16,32], index: 3, kind: output, shape index: {}]  }
   0x1   :  { %v130_v0 = vld [vmem:[%s196_s1 + $0x8] sm:$0xff]   ;;  %117 = vmatprep.subr.bf16.mxu0 %v155_v1  ;;  %v131_v2 = vld [vmem:[%s196_s1] sm:$0xff]   ;;  %121 = vmatprep.mubr.msk.bf16.mxu0 %vm156_vm0, %v155_v1 }
   0x2   :  { %118 = vmatpush3.bf16.msra.mxu0 %v130_v0 }
   0x3   :  { %119 = vmatprep.subr.bf16.mxu0 %v155_v1 }
   0x4   :  { %8 = vsyncpa [#allocation3], 0  ;;  %v132_v3 = vld [vmem:[%s195_s0] sm:$0xff]   ;;  %vm46_vm1 = vcmask 261120   ;;  %s157_s20 = smov [#allocation2]  }
   0x5   :  { %v109_v4 = vld [vmem:[%s197_s2] ss:$0 sm:$0xff]  ;;  %s98_s21 = sshll.u32 %s157_s20, 4  ;;  %s99_s21 = int_to_ptr.vmem [resolvable:$true] %s98_s21 }
   0x6   :  { %120 = vmatpush3.bf16.msra.mxu0 %v131_v2  ;;  %s133_s1 = scalar_lea.vmem %s99_s21, 256  ;;  %p138_p1 = scmp.lt.s32.totalorder %s99_s21, %s99_s21 }
   0x7   :  { %p134_p0 = scmp.ne.s32.totalorder %s99_s21, %s133_s1  ;;  %p139_p2 = scmp.lt.s32.totalorder %s133_s1, %s133_s1 }
   0x9   :  { %122 = vmatmul.mubr.msk.bf16.vlgmr.msra.gmra.mxu0 %vm46_vm1, %v132_v3  ;;  %p140_p3 = por %p139_p2, %p138_p1 }
   0xb   :  { %p141_p4 = pnand %p140_p3, %p134_p0 }
  0xc9   :  { %v84_v5 = vpop.f32.mrf.mxu0 }
  0xca   :  { %v85_v6 = vadd.f32 %v109_v4, %v84_v5 }
  0xcb   :  { %v123_v7 = vpop.f32.mrf.mxu0 }
  0xcc   :  { %91 = vst.msk [vmem:[#allocation2] sm:$0xff] %vm46_vm1, %v85_v6 }
  0xcd   :  { %v87_v8 = vpop.f32.mrf.mxu0 }
  0xce   :  { %v88_v9 = vadd.f32 %v109_v4, %v87_v8 }
  0xcf   :  { %v124_v10 = vpop.f32.mrf.mxu0 }
  0xd0   :  { %92 = vst.msk [vmem:[#allocation2 + $0x8] sm:$0xff] %vm46_vm1, %v88_v9 }
  0xd1   :  { %144 = shalt.err (!%p141_p4)
}
  0xd2   :  { %s158_s0 = smov 128   ;;  %s159_s2 = smov 8  }
  0xd3   :  { %104 = dma.vmem_to_hbm [thread:$0]  %s99_s21, 256, %s198_s3, [#allocation3], %s158_s0, %s158_s0, %s159_s2  }
  0xd4   :  { %153 = dma.done.wait [#allocation3], 256  }
  0xd5   :  { %154 = vsyncadd [#allocation3], 4294967040 }
  0xd6   :  { %108 = vsyncpa [#allocation3], 1 }

// kernel: _forward_cross.4
= control target key start
LH: loop header
LB: loop body
LE: loop exit
PB: predicated region body
PF: predicated region fallthrough
CT: control target
= control target key end

     0   :  { %s682_s12 = smov 0   ;;  %s684_s13 = smov 0   ;;  %s750_s0 = inlined_call_operand.vmem [shape: bf16[2,4,8,8], index: 0, kind: input, shape index: {}]   ;;  %s751_s1 = inlined_call_operand.vmem [shape: bf16[2,4,8,8], index: 1, kind: input, shape index: {}]   ;;  %s752_s2 = inlined_call_operand.vmem [shape: bf16[2,4,8,8], index: 2, kind: input, shape index: {}]   ;;  %s753_s3 = inlined_call_operand.vmem [shape: bf16[2,4,8,8], index: 3, kind: output, shape index: {}]  }
   0x1   :  { %s686_s14 = smov 0   ;;  %s688_s15 = smov 0  }
   0x2   :  { %s690_s16 = smov 0  }
   0x3 LB: > { %s28_s17 = sadd.s32 1, %s650_s14  ;;  %s32_s18 = sadd.s32 1, %s654_s15  ;;  %s658_s16 = sphi %s690_s16, %s13_s16   ;;  %s654_s15 = sphi %s688_s15, %s757_s15   ;;  %s650_s14 = sphi %s686_s14, %s756_s14   ;;  %s646_s13 = sphi %s684_s13, %s755_s13   ;;  %s642_s12 = sphi %s682_s12, %s754_s12  }
   0x4   : > { %p30_p0 = scmp.ge.s32.totalorder %s28_s17, 4  ;;  %p545_p1 = scmp.ge.s32.totalorder %s658_s16, 1 }
   0x5   : > { %p200_p2 = scmp.lt.s32.totalorder %s658_s16, 9 }
   0x6   : > { %s759_s17 = smov (%p30_p0, %s28_s17), 0  ;;  %s761_s18 = smov (!%p30_p0, %s32_s18), %s654_s15 }
   0x7   : > { %p201_p3 = pnand %p545_p1, %p200_p2  ;;  %p34_p4 = scmp.ge.s32.totalorder %s761_s18, 2 }
   0x8   : > { %p252_p5 = scmp.lt.s32.totalorder (!%p201_p3), %s646_s13, 1  ;;  %p254_p6 = scmp.lt.s32.totalorder (!%p201_p3), %s642_s12, 3 }
   0x9   : > { %s763_s18 = smov (%p34_p4, %s761_s18), 0  ;;  %204 = sbr.rel (%p201_p3) target bundleno = 579 (0x243), region = 32 }
   0xe   : > { %v660_v0 = vmov 0.0   ;;  %vm661_vm0 = vmmov 0   ;;  %s765_s13 = smov (!%p252_p5, %s646_s13), 1  ;;  %s767_s12 = smov (!%p254_p6, %s642_s12), 3  ;;  %vm294_vm1 = vcmask 64512   ;;  %vm354_vm2 = vcmask 1043456  }
   0xf   : > { %562 = vmatprep.subr.bf16.mxu0 %v660_v0  ;;  %564 = vmatprep.mubr.msk.bf16.mxu0 %vm661_vm0, %v660_v0  ;;  %s546_s19 = sshll.u32 %s765_s13, 2  ;;  %vm401_vm3 = vcmask 60416  }
  0x10   : > { %568 = vmatprep.subr.bf16.mxu1 %v660_v0  ;;  %570 = vmatprep.mubr.msk.bf16.mxu1 %vm661_vm0, %v660_v0  ;;  %s260_s20 = sadd.s32 %s546_s19, %s767_s12 }
  0x11   : > { %s712_s21 = sshll.u32 %s260_s20, 2 }
  0x12   : > { %s270_s24 = scalar_lea.vmem %s751_s1, %s712_s21  ;;  %s262_s27 = scalar_lea.vmem %s750_s0, %s712_s21 }
  0x13   : > { %v292_v1 = vld [vmem:[%s270_s24] sm:$0xf]  ;;  %s278_s30 = scalar_lea.vmem %s752_s2, %s712_s21  ;;  %s289_s6 = scalar_lea.vmem %s753_s3, %s712_s21 }
  0x14   : > { %v299_v2 = vsel %vm294_vm1, %v292_v1, 0  ;;  %v291_v3 = vld [vmem:[%s262_s27] sm:$0xf] }
  0x15   : > { %563 = vmatpush3.bf16.xpose.msra.mxu0 %v299_v2  ;;  %v293_v9 = vld [vmem:[%s278_s30] sm:$0xf] }
  0x16   : > { %v356_v10 = vsel %vm354_vm2, %v293_v9, 0 }
  0x17   : > { %569 = vmatpush3.bf16.msra.mxu1 %v356_v10 }
  0x1c   : > { %565 = vmatmul.mubr.msk.bf16.vlgmr.msra.gmra.mxu0 %vm294_vm1, %v291_v3 }
  0xdc   : > { %v335_v4 = vpop.f32.mrf.mxu0 }
  0xdd   : > { %v341_v5 = vsel %vm294_vm1, %v335_v4, -inf }
  0xde   : > { %342 = vmax.xlane.f32.xlu0 %v341_v5  ;;  %v566_v6 = vpop.f32.mrf.mxu0 }
  0xe0   : > { %v338_v7 = vpop.f32.mrf.mxu0 }
  0xe2   : > { %v567_v8 = vpop.f32.mrf.mxu0 }
 0x167   : > { %v343_v11 = vpop.xlane.xlu0 %342 }
 0x168   : > { %v344_v12 = vsub.f32 %v335_v4, %v343_v11 }
 0x16a   : > { %v345_v13 = vmul.f32 1.442695, %v344_v12 }
 0x16c   : > { %616 = vpow2.f32 %v345_v13 }
 0x179   : > { %v617_v14 = vpop.eup %616 }
 0x17a   : > { %v347_v15 = vsel %vm294_vm1, %v617_v14, 0.0  ;;  %v350_v16 = vpack.c.bf16 %v617_v14, %v617_v14 }
 0x17b   : > { %348 = vadd.xlane.f32.xlu0 %v347_v15 }
 0x17c   : > { %571 = vmatmul.mubr.msk.bf16.vlgmr.msra.gmra.mxu1 %vm294_vm1, %v350_v16 }
 0x204   : > { %v349_v17 = vpop.xlane.xlu0 %348 }
 0x205   : > { %618 = vrcp.f32 %v349_v17 }
 0x212   : > { %v619_v18 = vpop.eup %618 }
 0x23c   : > { %v392_v19 = vpop.f32.mrf.mxu1 }
 0x23d   : > { %v399_v20 = vmul.f32 %v619_v18, %v392_v19 }
 0x23e   : > { %v572_v21 = vpop.f32.mrf.mxu1 }
 0x23f   : > { %v400_v22 = vpack.c.bf16 %v399_v20, %v399_v20 }
 0x240   : > { %v395_v23 = vpop.f32.mrf.mxu1 }
 0x241   : > { %402 = vst.msk [vmem:[%s289_s6] sm:$0xf] %vm401_vm3, %v400_v22 }
 0x242   : > { %v573_v24 = vpop.f32.mrf.mxu1 }
 0x243 PF: > { %s13_s16 = sadd.s32 1, %s658_s16   ;;  %s754_s12 = smov %s650_s14 }
 0x244   : > { %p10_p7 = scmp.ge.s32.totalorder %s13_s16, 10   ;;  %s755_s13 = smov %s654_s15 }
 0x245   : > { %s756_s14 = smov %s759_s17  ;;  %s757_s15 = smov %s763_s18 }
 0x246   :  { %12 = sbr.rel (!%p10_p7) target bundleno = 3 (0x3), region = 68 }

// kernel: _forward_cross.3
= control target key start
LH: loop header
LB: loop body
LE: loop exit
PB: predicated region body
PF: predicated region fallthrough
CT: control target
= control target key end

     0   :  { %v355_v0 = vmov 0.0   ;;  %vm356_vm0 = vmmov 0   ;;  %vm62_vm1 = vcmask 261120   ;;  %vm115_vm2 = vcmask 257024   ;;  %s492_s3 = inlined_call_operand.vmem [shape: bf16[32,32], index: 3, kind: input, shape index: {}]   ;;  %s493_s4 = inlined_call_operand.vmem [shape: bf16[32,32], index: 4, kind: input, shape index: {}]   ;;  %s494_s0 = inlined_call_operand.vmem [shape: f32[16,32], index: 0, kind: input, shape index: {}]   ;;  %s495_s5 = inlined_call_operand.vmem [shape: bf16[32,32], index: 5, kind: input, shape index: {}]   ;;  %s496_s1 = inlined_call_operand.vmem [shape: f32[16,32], index: 1, kind: input, shape index: {}]   ;;  %s497_s2 = inlined_call_operand.vmem [shape: f32[16,32], index: 2, kind: input, shape index: {}]   ;;  %s498_s6 = inlined_call_operand.vmem [shape: f32[1,32], index: 6, kind: input, shape index: {}]   ;;  %s499_s7 = inlined_call_operand.vmem [shape: f32[1,32], index: 7, kind: input, shape index: {}]   ;;  %s500_s9 = inlined_call_operand.vmem [shape: bf16[16,32], index: 9, kind: output, shape index: {0}]   ;;  %s501_s10 = inlined_call_operand.vmem [shape: bf16[16,32], index: 10, kind: output, shape index: {1}]   ;;  %s502_s8 = inlined_call_operand.vmem [shape: f32[1,32], index: 8, kind: input, shape index: {}]   ;;  %s503_s11 = inlined_call_operand.vmem [shape: bf16[16,32], index: 11, kind: output, shape index: {2}]  }
   0x1   :  { %323 = vmatprep.subr.bf16.mxu0 %v355_v0  ;;  %v349_v1 = vld [vmem:[%s492_s3 + $0x8] sm:$0xff]   ;;  %331 = vmatprep.subr.bf16.mxu1 %v355_v0  ;;  %v351_v3 = vld [vmem:[%s492_s3] sm:$0xff]  }
   0x2   :  { %v350_v2 = vld [vmem:[%s493_s4 + $0x8] sm:$0xff]   ;;  %327 = vmatprep.mubr.msk.bf16.mxu0 %vm356_vm0, %v355_v0  ;;  %335 = vmatprep.mubr.msk.bf16.mxu1 %vm356_vm0, %v355_v0  ;;  %v36_v4 = vld [vmem:[%s494_s0] sm:$0xff] }
   0x3   :  { %324 = vmatpush3.bf16.msra.mxu0 %v349_v1  ;;  %332 = vmatpush3.bf16.msra.mxu1 %v350_v2  ;;  %v37_v5 = vld [vmem:[%s494_s0 + $0x8] sm:$0xff]  ;;  %v352_v6 = vld [vmem:[%s493_s4] sm:$0xff]  }
   0x4   :  { %325 = vmatprep.subr.bf16.mxu0 %v355_v0  ;;  %333 = vmatprep.subr.bf16.mxu1 %v355_v0  ;;  %v38_v7 = vpack.c.bf16 %v37_v5, %v36_v4  ;;  %v353_v8 = vld [vmem:[%s495_s5 + $0x8] sm:$0xff]   ;;  %v118_v9 = vld [vmem:[%s496_s1] sm:$0xff] }
   0x5   :  { %v119_v10 = vld [vmem:[%s496_s1 + $0x8] sm:$0xff]  ;;  %v354_v12 = vld [vmem:[%s495_s5] sm:$0xff]  }
   0x6   :  { %v120_v11 = vpack.c.bf16 %v119_v10, %v118_v9  ;;  %v198_v13 = vld [vmem:[%s497_s2] sm:$0xff]  ;;  %v199_v14 = vld [vmem:[%s497_s2 + $0x8] sm:$0xff] }
   0x7   :  { %326 = vmatpush3.bf16.msra.mxu0 %v351_v3  ;;  %334 = vmatpush3.bf16.msra.mxu1 %v352_v6  ;;  %v200_v15 = vpack.c.bf16 %v199_v14, %v198_v13  ;;  %v290_v16 = vld [vmem:[%s498_s6] ss:$0 sm:$0xff] }
   0x8   :  { %339 = vmatprep.subr.bf16.mxu0 %v355_v0  ;;  %v296_v17 = vld [vmem:[%s499_s7] ss:$0 sm:$0xff] }
   0x9   :  { %v302_v31 = vld [vmem:[%s502_s8] ss:$0 sm:$0xff] }
   0xa   :  { %328 = vmatmul.mubr.msk.bf16.vlgmr.msra.gmra.mxu0 %vm62_vm1, %v38_v7  ;;  %336 = vmatmul.mubr.msk.bf16.vlgmr.msra.gmra.mxu1 %vm62_vm1, %v120_v11 }
   0xb   :  { %340 = vmatpush3.bf16.msra.mxu0 %v353_v8  ;;  %343 = vmatprep.mubr.msk.bf16.mxu0 %vm356_vm0, %v355_v0 }
   0xc   :  { %341 = vmatprep.subr.bf16.mxu0 %v355_v0 }
   0xf   :  { %342 = vmatpush3.bf16.msra.mxu0 %v354_v12 }
  0x12   :  { %344 = vmatmul.mubr.msk.bf16.vlgmr.msra.gmra.mxu0 %vm62_vm1, %v200_v15 }
  0xca   :  { %v100_v18 = vpop.f32.mrf.mxu0  ;;  %v181_v20 = vpop.f32.mrf.mxu1 }
  0xcb   :  { %v101_v19 = vadd.f32 %v290_v16, %v100_v18  ;;  %v182_v22 = vadd.f32 %v296_v17, %v181_v20 }
  0xcc   :  { %v329_v21 = vpop.f32.mrf.mxu0  ;;  %v337_v24 = vpop.f32.mrf.mxu1 }
  0xcd   :  { %v308_v23 = vpack.c.bf16 %v101_v19, %v101_v19  ;;  %v310_v25 = vpack.c.bf16 %v182_v22, %v182_v22 }
  0xce   :  { %v103_v26 = vpop.f32.mrf.mxu0  ;;  %v184_v28 = vpop.f32.mrf.mxu1 }
  0xcf   :  { %116 = vst.msk [vmem:[%s500_s9] sm:$0xf] %vm115_vm2, %v308_v23  ;;  %v104_v27 = vadd.f32 %v290_v16, %v103_v26  ;;  %196 = vst.msk [vmem:[%s501_s10] sm:$0xf] %vm115_vm2, %v310_v25  ;;  %v185_v30 = vadd.f32 %v296_v17, %v184_v28 }
  0xd0   :  { %v330_v29 = vpop.f32.mrf.mxu0  ;;  %v338_v33 = vpop.f32.mrf.mxu1 }
  0xd1   :  { %v309_v32 = vpack.c.bf16 %v104_v27, %v104_v27  ;;  %v311_v34 = vpack.c.bf16 %v185_v30, %v185_v30 }
  0xd2   :  { %v261_v35 = vpop.f32.mrf.mxu0 }
  0xd3   :  { %117 = vst.msk [vmem:[%s500_s9 + $0x4] sm:$0xf] %vm115_vm2, %v309_v32  ;;  %v262_v36 = vadd.f32 %v302_v31, %v261_v35  ;;  %197 = vst.msk [vmem:[%s501_s10 + $0x4] sm:$0xf] %vm115_vm2, %v311_v34 }
  0xd4   :  { %v345_v37 = vpop.f32.mrf.mxu0 }
  0xd5   :  { %v312_v38 = vpack.c.bf16 %v262_v36, %v262_v36 }
  0xd6   :  { %v264_v39 = vpop.f32.mrf.mxu0 }
  0xd7   :  { %276 = vst.msk [vmem:[%s503_s11] sm:$0xf] %vm115_vm2, %v312_v38  ;;  %v265_v40 = vadd.f32 %v302_v31, %v264_v39 }
  0xd8   :  { %v346_v41 = vpop.f32.mrf.mxu0 }
  0xd9   :  { %v313_v42 = vpack.c.bf16 %v265_v40, %v265_v40 }
  0xdb   :  { %277 = vst.msk [vmem:[%s503_s11 + $0x4] sm:$0xf] %vm115_vm2, %v313_v42 }

</bundles_post_ra>
